<compile_context>
chip_gen: v7x
topology: tpu7x:2x2x1
jax: 0.10.0
libtpu: 0.0.40
codegen_flags: <defaults>
</compile_context>

<pallas_src>
import numpy as np
import jax
import jax.numpy as jnp
from jax.experimental import pallas as pl
from jax.experimental.pallas import tpu as pltpu

LANE = 128


def _round_up(v, m):
    return (v + m - 1) // m * m


def _split(total, target, align):
    """Split `total` into n equal tiles of size ~target (multiple of `align`),
    minimising zero padding.  Returns (tile, padded_total, n_tiles)."""
    n = max(1, -(-total // target))
    tile = _round_up(-(-total // n), align)
    return tile, tile * n, n


def _spline_kernel_single(a_ref, h_ref, r_ref, o_ref):
    """No reduction axis: one (tm, Kp) @ (Kp, tn) MXU pass per output tile."""
    o_ref[...] = r_ref[...] + jnp.dot(
        a_ref[...], h_ref[...], preferred_element_type=jnp.float32)


def _spline_kernel_multi(a_ref, h_ref, r_ref, o_ref):
    """Reduction (k) axis last: accumulate straight into the resident f32
    output block (no scratch); the root+bias term seeds the accumulator."""
    @pl.when(pl.program_id(2) == 0)
    def _init():
        o_ref[...] = r_ref[...]

    o_ref[...] += jnp.dot(a_ref[...], h_ref[...],
                          preferred_element_type=jnp.float32)


@jax.jit
def spline_conv(x, edge_index, edge_attr, weight, root_weight, bias):
    """GraphGym SplineConv forward: XLA glue builds the spline-weighted,
    mean-normalised dense adjacency + small feature transforms; the tiled
    Pallas kernel does the single big MXU matmul."""
    N, dim_in = x.shape
    dim_out = weight.shape[2]
    src, dst = edge_index[0], edge_index[1]

    # ---- per-edge degree-1 B-spline basis, 1/in-degree folded in -----------
    u = edge_attr[:, 0].astype(jnp.float32)                 # pseudo coords
    cnt = jnp.zeros((N,), jnp.float32).at[dst].add(1.0)
    inv = jnp.where(cnt > 0.0, 1.0 / cnt, 0.0)              # isolated -> 0
    scale = inv[dst]
    b0 = (1.0 - u) * scale
    b1 = u * scale

    # ---- adaptive, padding-minimising tile plan -----------------------------
    tm, Np, n_i = _split(N, 512, 8)                          # dst-row tiles
    dop0 = _round_up(dim_out, LANE)
    if dop0 <= 512:                                          # whole feature dim:
        tn, dop, n_j = dop0, dop0, 1                         #   A streamed once
    else:
        tn, dop, n_j = _split(dop0, 256, LANE)               # 256 = v6e/v7x MXU
    Kp0 = _round_up(2 * N, LANE)
    if Kp0 <= 2048:                                          # one reduction step:
        tk, Kp, n_k = Kp0, Kp0, 1                            #   no k axis at all
    else:
        tk, Kp, n_k = _split(2 * N, 2048, LANE)

    # ---- operands built directly at padded size (no concat / extra pad) -----
    A_p = (jnp.zeros((Np, Kp), jnp.float32)
           .at[dst, src].add(b0)
           .at[dst, src + N].add(b1)
           .astype(jnp.bfloat16))                            # (Np, Kp)  bf16

    xf = x.astype(jnp.float32)
    H_p = jnp.zeros((Kp, dop), jnp.bfloat16)
    H_p = H_p.at[:N, :dim_out].set((xf @ weight[0]).astype(jnp.bfloat16))
    H_p = H_p.at[N:2 * N, :dim_out].set((xf @ weight[1]).astype(jnp.bfloat16))

    R_p = (jnp.zeros((Np, dop), jnp.float32)
           .at[:N, :dim_out].set(xf @ root_weight + bias.astype(jnp.float32)))

    flops = 2 * Np * Kp * dop
    bytes_accessed = (Np * Kp * 2                # A streamed once (tn = dop)
                      + n_i * Kp * dop * 2       # H re-streamed per row tile
                      + Np * dop * 4             # R
                      + Np * dop * 4)            # out
    cost = pl.CostEstimate(flops=flops, transcendentals=0,
                           bytes_accessed=bytes_accessed)
    cparams = pltpu.CompilerParams(
        dimension_semantics=(("parallel", "parallel") if n_k == 1
                             else ("parallel", "parallel", "arbitrary")),
        vmem_limit_bytes=48 * 1024 * 1024,
    )

    if n_k == 1:
        out_p = pl.pallas_call(
            _spline_kernel_single,
            out_shape=jax.ShapeDtypeStruct((Np, dop), jnp.float32),
            grid=(n_i, n_j),
            in_specs=[
                pl.BlockSpec((tm, Kp), lambda i, j: (i, 0)),   # A row panel
                pl.BlockSpec((Kp, tn), lambda i, j: (0, j)),   # H column panel
                pl.BlockSpec((tm, tn), lambda i, j: (i, j)),   # root + bias
            ],
            out_specs=pl.BlockSpec((tm, tn), lambda i, j: (i, j)),
            compiler_params=cparams,
            cost_estimate=cost,
        )(A_p, H_p, R_p)
    else:
        out_p = pl.pallas_call(
            _spline_kernel_multi,
            out_shape=jax.ShapeDtypeStruct((Np, dop), jnp.float32),
            grid=(n_i, n_j, n_k),                              # reduction last
            in_specs=[
                pl.BlockSpec((tm, tk), lambda i, j, k: (i, k)),
                pl.BlockSpec((tk, tn), lambda i, j, k: (k, j)),
                pl.BlockSpec((tm, tn), lambda i, j, k: (i, j)),
            ],
            out_specs=pl.BlockSpec((tm, tn), lambda i, j, k: (i, j)),
            compiler_params=cparams,
            cost_estimate=cost,
        )(A_p, H_p, R_p)

    return out_p[:N, :dim_out]


def ref_spline_conv(x, edge_index, edge_attr, weight, root_weight, bias, num_nodes):
    """Edge-wise NumPy reference mirroring pyg.nn.SplineConv(dim=1, kernel_size=2)."""
    x = np.asarray(x, np.float64)
    src = np.asarray(edge_index[0])
    dst = np.asarray(edge_index[1])
    u = np.asarray(edge_attr, np.float64)[:, 0]
    b0, b1 = 1.0 - u, u
    w = np.asarray(weight, np.float64)
    h0, h1 = x @ w[0], x @ w[1]
    msg = b0[:, None] * h0[src] + b1[:, None] * h1[src]

    dim_out = w.shape[2]
    agg = np.zeros((num_nodes, dim_out), np.float64)
    np.add.at(agg, dst, msg)
    cnt = np.zeros(num_nodes, np.float64)
    np.add.at(cnt, dst, 1.0)
    agg = agg / np.maximum(cnt, 1.0)[:, None]            # mean (0 rows stay 0)
    return agg + x @ np.asarray(root_weight, np.float64) + np.asarray(bias, np.float64)


def _run_case(key, N, E, dim_in, dim_out):
    k1, k2, k3, k4, k5, k6 = jax.random.split(key, 6)
    edge_index = jax.random.randint(k1, (2, E), 0, N, dtype=jnp.int32)
    edge_attr = jax.random.uniform(k2, (E, 1), jnp.float32)          # in [0, 1)
    x = jax.random.normal(k3, (N, dim_in), jnp.float32)

    limit = (6.0 / (dim_in + dim_out)) ** 0.5
    weight = jax.random.uniform(k4, (2, dim_in, dim_out), jnp.float32, -limit, limit)
    root_w = jax.random.uniform(k5, (dim_in, dim_out), jnp.float32, -limit, limit)
    bias = jax.random.uniform(k6, (dim_out,), jnp.float32, -0.1, 0.1)

    out = jax.block_until_ready(
        spline_conv(x, edge_index, edge_attr, weight, root_w, bias))
    ref = ref_spline_conv(x, edge_index, edge_attr, weight, root_w, bias, N)

    assert out.shape == (N, dim_out)
    # Tolerance accounts for bf16 MXU operands (accumulation stays in f32).
    err = np.max(np.abs(np.asarray(out, np.float64) - ref))
    assert np.allclose(np.asarray(out), ref, atol=2e-2, rtol=2e-2), f"max err {err}"


if __name__ == "__main__":
    key0, key1, key2 = jax.random.split(jax.random.PRNGKey(0), 3)
    # Small shape from the spec: single tile, single reduction step.
    _run_case(key0, N=16, E=40, dim_in=8, dim_out=16)
    # Moderate shape: single-step kernel, whole-row tile, zero row padding.
    _run_case(key1, N=384, E=2000, dim_in=32, dim_out=64)
    # Larger shape: 2N > 2048 -> multi-step reduction kernel (grid 3 x 1 x 2,
    # pl.when-seeded accumulation into the resident output block).
    _run_case(key2, N=1152, E=4000, dim_in=32, dim_out=192)
    print("KERNEL_OK")
</pallas_src>

<mosaic_0001>
module attributes {stable_mosaic.version = 11 : i64} {
  func.func @_spline_kernel_single(%arg0: i32, %arg1: i32, %arg2: memref<16x128xbf16, #tpu.memory_space<vmem>>, %arg3: memref<128x128xbf16, #tpu.memory_space<vmem>>, %arg4: memref<16x128xf32, #tpu.memory_space<vmem>>, %arg5: memref<16x128xf32, #tpu.memory_space<vmem>>) attributes {dimension_semantics = [#tpu.dimension_semantics<parallel>, #tpu.dimension_semantics<parallel>], iteration_bounds = array<i64: 1, 1>, scalar_prefetch = 0 : i64, scratch_operands = 0 : i64, tpu.core_type = #tpu.core_type<tc>, window_params = [{transform_indices = @transform_0, window_bounds = array<i64: 16, 128>}, {transform_indices = @transform_1, window_bounds = array<i64: 128, 128>}, {transform_indices = @transform_2, window_bounds = array<i64: 16, 128>}, {transform_indices = @transform_3, window_bounds = array<i64: 16, 128>}]} {
    %c0 = arith.constant 0 : index
    %c0_0 = arith.constant 0 : index
    %0 = vector.load %arg4[%c0, %c0_0] : memref<16x128xf32, #tpu.memory_space<vmem>>, vector<16x128xf32>
    %c0_1 = arith.constant 0 : index
    %c0_2 = arith.constant 0 : index
    %1 = vector.load %arg2[%c0_1, %c0_2] : memref<16x128xbf16, #tpu.memory_space<vmem>>, vector<16x128xbf16>
    %c0_3 = arith.constant 0 : index
    %c0_4 = arith.constant 0 : index
    %2 = vector.load %arg3[%c0_3, %c0_4] : memref<128x128xbf16, #tpu.memory_space<vmem>>, vector<128x128xbf16>
    %cst = arith.constant dense<0.000000e+00> : vector<16x128xf32>
    %3 = tpu.matmul %1, %2, %cst {dimension_numbers = #tpu.dot_dimension_numbers<[1], [0], [0], [1], [0, 0, 1, 1], [], []>} : vector<16x128xbf16>, vector<128x128xbf16>, vector<16x128xf32> -> vector<16x128xf32>
    %4 = arith.addf %0, %3 : vector<16x128xf32>
    %c0_5 = arith.constant 0 : index
    %c0_6 = arith.constant 0 : index
    %5 = vector.load %arg5[%c0_5, %c0_6] : memref<16x128xf32, #tpu.memory_space<vmem>>, vector<16x128xf32>
    tpu.vector_store %arg5[%c0_5, %c0_6], %4 {strides = array<i32>} : memref<16x128xf32, #tpu.memory_space<vmem>>, vector<16x128xf32>,
    return
  }
  func.func @transform_0(%arg0: i32, %arg1: i32) -> (i32, i32) {
    %c0_i32 = arith.constant 0 : i32
    %c0_i32_0 = arith.constant 0 : i32
    return %arg0, %c0_i32 : i32, i32
  }
  func.func @transform_1(%arg0: i32, %arg1: i32) -> (i32, i32) {
    %c0_i32 = arith.constant 0 : i32
    %c0_i32_0 = arith.constant 0 : i32
    return %c0_i32, %arg1 : i32, i32
  }
  func.func @transform_2(%arg0: i32, %arg1: i32) -> (i32, i32) {
    %c0_i32 = arith.constant 0 : i32
    return %arg0, %arg1 : i32, i32
  }
  func.func @transform_3(%arg0: i32, %arg1: i32) -> (i32, i32) {
    %c0_i32 = arith.constant 0 : i32
    return %arg0, %arg1 : i32, i32
  }
}

</mosaic_0001>

<bundles_post_ra>
// kernel: spline_conv.1
= control target key start
LH: loop header
LB: loop body
LE: loop exit
PB: predicated region body
PF: predicated region fallthrough
CT: control target
= control target key end

     0   :  { %v227_v1 = vmov 0.0   ;;  %vm228_vm0 = vmmov 0   ;;  %s297_s0 = inlined_call_operand.vmem [shape: bf16[16,128], index: 0, kind: input, shape index: {}]   ;;  %s298_s1 = inlined_call_operand.vmem [shape: bf16[128,128], index: 1, kind: input, shape index: {}]   ;;  %s299_s2 = inlined_call_operand.vmem [shape: f32[16,128], index: 2, kind: input, shape index: {}]   ;;  %s300_s3 = inlined_call_operand.hbm [shape: f32[16,128], index: 3, kind: output, shape index: {}]  }
   0x1   :  { %v194_v0 = vld [vmem:[%s298_s1] sm:$0xff]   ;;  %169 = vmatprep.subr.bf16.mxu0 %v227_v1  ;;  %v195_v2 = vld [vmem:[%s298_s1 + $0x8] sm:$0xff]   ;;  %185 = vmatprep.mubr.msk.bf16.mxu0 %vm228_vm0, %v227_v1  ;;  %v196_v3 = vld [vmem:[%s298_s1 + $0x10] sm:$0xff]  }
   0x2   :  { %170 = vmatpush3.bf16.msra.mxu0 %v194_v0 }
   0x3   :  { %171 = vmatprep.subr.bf16.mxu0 %v227_v1 }
   0x6   :  { %172 = vmatpush3.bf16.msra.mxu0 %v195_v2 }
   0x7   :  { %173 = vmatprep.subr.bf16.mxu0 %v227_v1 }
   0x8   :  { %8 = vsyncpa [#allocation3], 0  ;;  %v197_v4 = vld [vmem:[%s298_s1 + $0x18] sm:$0xff]   ;;  %v198_v5 = vld [vmem:[%s298_s1 + $0x20] sm:$0xff]   ;;  %s229_s5 = smov [#allocation2]  }
   0x9   :  { %v199_v6 = vld [vmem:[%s298_s1 + $0x28] sm:$0xff]   ;;  %v200_v7 = vld [vmem:[%s298_s1 + $0x30] sm:$0xff]   ;;  %v201_v8 = vld [vmem:[%s298_s1 + $0x38] sm:$0xff]   ;;  %s140_s6 = sshll.u32 %s229_s5, 4  ;;  %s141_s6 = int_to_ptr.vmem [resolvable:$true] %s140_s6 }
   0xa   :  { %174 = vmatpush3.bf16.msra.mxu0 %v196_v3  ;;  %v202_v9 = vld [vmem:[%s297_s0] sm:$0xff]   ;;  %v17_v12 = vld [vmem:[%s299_s2 + $0x8] sm:$0xff]  ;;  %s203_s0 = scalar_lea.vmem %s141_s6, 256  ;;  %p208_p1 = scmp.lt.s32.totalorder %s141_s6, %s141_s6 }
   0xb   :  { %175 = vmatprep.subr.bf16.mxu0 %v227_v1  ;;  %v16_v10 = vld [vmem:[%s299_s2] sm:$0xff]  ;;  %p204_p0 = scmp.ne.s32.totalorder %s141_s6, %s203_s0  ;;  %p209_p2 = scmp.lt.s32.totalorder %s203_s0, %s203_s0 }
   0xd   :  { %p210_p3 = por %p209_p2, %p208_p1 }
   0xe   :  { %176 = vmatpush3.bf16.msra.mxu0 %v197_v4 }
   0xf   :  { %177 = vmatprep.subr.bf16.mxu0 %v227_v1  ;;  %p211_p4 = pnand %p210_p3, %p204_p0 }
  0x12   :  { %178 = vmatpush3.bf16.msra.mxu0 %v198_v5 }
  0x13   :  { %179 = vmatprep.subr.bf16.mxu0 %v227_v1 }
  0x16   :  { %180 = vmatpush3.bf16.msra.mxu0 %v199_v6 }
  0x17   :  { %181 = vmatprep.subr.bf16.mxu0 %v227_v1 }
  0x1a   :  { %182 = vmatpush3.bf16.msra.mxu0 %v200_v7 }
  0x1b   :  { %183 = vmatprep.subr.bf16.mxu0 %v227_v1 }
  0x1e   :  { %184 = vmatpush3.bf16.msra.mxu0 %v201_v8 }
  0x21   :  { %186 = vmatmul.mubr.bf16.vlgmr.msra.gmra.mrb[0].mxu0 %v202_v9 }
  0xf4   :  { %v124_v11 = vpop.f32.mrb[0].mxu0 }
  0xf5   :  { %v131_v13 = vadd.f32 %v124_v11, %v16_v10  ;;  %v187_v14 = vpop.f32.mrb[1].mxu0 }
  0xf6   :  { %v127_v15 = vpop.f32.mrb[2].mxu0 }
  0xf7   :  { %133 = vst [vmem:[#allocation2] sm:$0xff] %v131_v13  ;;  %v132_v16 = vadd.f32 %v127_v15, %v17_v12  ;;  %v188_v17 = vpop.f32.mrb[3].mxu0 }
  0xf9   :  { %134 = vst [vmem:[#allocation2 + $0x8] sm:$0xff] %v132_v16 }
  0xfa   :  { %214 = shalt.err (!%p211_p4)
}
  0xfb   :  { %s215_s10 = scalar_lea.hbm %s300_s3, 256 }
  0xfc   :  { %p216_p5 = scmp.ne.s32.totalorder %s300_s3, %s215_s10  ;;  %p219_p6 = scmp.lt.u32.totalorder %s215_s10, %s300_s3 }
  0xfe   :  { %p221_p7 = pnand %p219_p6, %p216_p5 }
 0x100   :  { %224 = shalt.err (!%p221_p7)
}
 0x101   :  { %s230_s14 = smov 128   ;;  %s231_s15 = smov 8  }
 0x102   :  { %146 = dma.vmem_to_hbm [thread:$0]  %s141_s6, 256, %s300_s3, [#allocation3], %s230_s14, %s230_s14, %s231_s15  }
 0x103   :  { %225 = dma.done.wait [#allocation3], 256  }
 0x104   :  { %226 = vsyncadd [#allocation3], 4294967040 }
 0x105   :  { %150 = vsyncpa [#allocation3], 1 }

</bundles_post_ra>
